<compile_context>
chip_gen: v5e
topology: v5e:2x2
jax: 0.10.0
libtpu: 0.0.40
codegen_flags: <defaults>
</compile_context>

<pallas_src>
import functools

import jax
import jax.numpy as jnp
from jax.experimental import pallas as pl

K = 9          # temporal kernel size
EPS = 1e-5     # BatchNorm eps
# TODO(synk): stride > 1 not implemented (module default stride=1 is used).


def _fused_kernel(imc_ref, w_ref, gb_ref, o_ref, *, n_batch, tv):
    # imc_ref: (K*Cin, N*TV)   w_ref: (Cout, K*Cin)   gb_ref: (2, Cout, 1)
    # o_ref  : (N, Cout, TV)
    # One lane-dense MXU matmul over the whole batch, f32 accumulation.
    y = jnp.dot(w_ref[...], imc_ref[...],
                preferred_element_type=jnp.float32)          # (Cout, N*TV)

    # Training-mode BatchNorm statistics over (N, T, V): biased variance,
    # two-pass (y is resident), single XLU reduction per pass.
    count = float(n_batch * tv)
    mean = jnp.sum(y, axis=1, keepdims=True) / count          # (Cout, 1)
    c = y - mean
    var = jnp.sum(c * c, axis=1, keepdims=True) / count       # (Cout, 1)
    inv_std = jax.lax.rsqrt(var + EPS)

    scale = gb_ref[0] * inv_std                               # gamma * inv_std
    shift = gb_ref[1] - mean * scale                          # beta - mean*scale
    out = y * scale + shift                                   # (Cout, N*TV)

    # Per-sample stores: 256-lane-aligned slices, full-width unmasked vst,
    # output already NCHW-ordered as (N, Cout, T*V).
    for n in range(n_batch):
        o_ref[n] = out[:, n * tv:(n + 1) * tv]


def tcn_forward(x_nchw, w_oihw, bias, gamma, beta):
    # `bias` is intentionally unused: a per-channel constant bias cancels
    # exactly under the training-mode BatchNorm that immediately follows.
    del bias
    N, Cin, T, V = x_nchw.shape
    Cout = w_oihw.shape[0]
    pad = (K - 1) // 2
    TV = T * V

    # ---- wrapper-side im2col (fused by XLA under jit) ----
    # x (N,Cin,T,V) -> zero-pad time -> stack the K temporal taps -> reorder so
    # contraction rows are r = k*Cin + ci and columns are n*TV + t*V + v.
    xf = x_nchw.astype(jnp.float32)
    x_pad = jnp.pad(xf, ((0, 0), (0, 0), (pad, pad), (0, 0)))
    taps = jnp.stack([x_pad[:, :, k:k + T, :] for k in range(K)], axis=0)
    imc = jnp.transpose(taps, (0, 2, 1, 3, 4)).reshape(K * Cin, N * TV)

    # Conv2d weight (Cout, Cin, K, 1) -> (Cout, K*Cin), row order k*Cin + ci.
    w2 = jnp.transpose(w_oihw[:, :, :, 0].astype(jnp.float32),
                       (0, 2, 1)).reshape(Cout, K * Cin)

    # Consolidated per-channel BN params: (2, Cout, 1) = [gamma; beta].
    gb = jnp.stack([gamma.astype(jnp.float32).reshape(Cout, 1),
                    beta.astype(jnp.float32).reshape(Cout, 1)], axis=0)

    kernel = functools.partial(_fused_kernel, n_batch=N, tv=TV)
    out = pl.pallas_call(
        kernel,
        out_shape=jax.ShapeDtypeStruct((N, Cout, TV), jnp.float32),
        # No grid: every array is a single whole-array VMEM block; conv,
        # batch stats and BN apply all happen in one launch.
    )(imc, w2, gb)

    # (N, Cout, T*V) -> (N, Cout, T, V): pure reshape, already NCHW.
    return out.reshape(N, Cout, T, V)


if __name__ == "__main__":
    key = jax.random.PRNGKey(0)
    N, Cin, T, V = 2, 4, 16, 16
    Cout = 8

    kx, kw = jax.random.split(key)
    x = jax.random.normal(kx, (N, Cin, T, V), dtype=jnp.float32)

    # Conv2d weight (Cout, Cin, K, 1); kaiming_normal_(mode='fan_out'):
    #   fan_out = Cout * K * 1, std = sqrt(2 / fan_out)
    fan_out = Cout * K * 1
    w = jax.random.normal(kw, (Cout, Cin, K, 1), dtype=jnp.float32) * jnp.sqrt(
        2.0 / fan_out)
    b = jnp.zeros((Cout,), jnp.float32)        # conv_init: bias = 0
    gamma = jnp.ones((Cout,), jnp.float32)     # bn_init(bn, 1): weight = 1
    beta = jnp.zeros((Cout,), jnp.float32)     # bn_init: bias = 0

    tcn_fn = jax.jit(tcn_forward)
    out = jax.block_until_ready(tcn_fn(x, w, b, gamma, beta))

    # pure-JAX reference for a correctness sanity check (training-mode BN)
    y_ref = jax.lax.conv_general_dilated(
        x, w, window_strides=(1, 1), padding=((4, 4), (0, 0)),
        dimension_numbers=('NCHW', 'OIHW', 'NCHW')) + b[None, :, None, None]
    mean = y_ref.mean(axis=(0, 2, 3))
    var = y_ref.var(axis=(0, 2, 3))
    ref = ((y_ref - mean[None, :, None, None])
           / jnp.sqrt(var + EPS)[None, :, None, None]
           * gamma[None, :, None, None] + beta[None, :, None, None])

    assert out.shape == (N, Cout, T, V)
    err = float(jnp.max(jnp.abs(out - ref)))
    assert err < 1e-4, err
    print("KERNEL_OK")
</pallas_src>

<mosaic_0001>
module attributes {stable_mosaic.version = 11 : i64} {
  func.func @_fused_kernel(%arg0: memref<36x512xf32, #tpu.memory_space<vmem>>, %arg1: memref<8x36xf32, #tpu.memory_space<vmem>>, %arg2: memref<2x8x1xf32, #tpu.memory_space<vmem>>, %arg3: memref<2x8x256xf32, #tpu.memory_space<vmem>>) attributes {dimension_semantics = [], scalar_prefetch = 0 : i64, scratch_operands = 0 : i64, tpu.core_type = #tpu.core_type<tc>} {
    %c0 = arith.constant 0 : index
    %c0_0 = arith.constant 0 : index
    %0 = vector.load %arg1[%c0, %c0_0] : memref<8x36xf32, #tpu.memory_space<vmem>>, vector<8x36xf32>
    %c0_1 = arith.constant 0 : index
    %c0_2 = arith.constant 0 : index
    %1 = vector.load %arg0[%c0_1, %c0_2] : memref<36x512xf32, #tpu.memory_space<vmem>>, vector<36x512xf32>
    %cst = arith.constant dense<0.000000e+00> : vector<8x512xf32>
    %2 = tpu.matmul %0, %1, %cst {dimension_numbers = #tpu.dot_dimension_numbers<[1], [0], [0], [1], [0, 0, 1, 1], [], []>} : vector<8x36xf32>, vector<36x512xf32>, vector<8x512xf32> -> vector<8x512xf32>
    %cst_3 = arith.constant dense<0.000000e+00> : vector<8xf32>
    %3 = vector.multi_reduction <add>, %2, %cst_3 [1] : vector<8x512xf32> to vector<8xf32>
    %4 = vector.shape_cast %3 : vector<8xf32> to vector<8x1xf32>
    %cst_4 = arith.constant 5.120000e+02 : f32
    %5 = vector.broadcast %cst_4 : f32 to vector<8x1xf32>
    %6 = arith.divf %4, %5 : vector<8x1xf32>
    %7 = vector.broadcast %6 : vector<8x1xf32> to vector<8x512xf32>
    %8 = arith.subf %2, %7 : vector<8x512xf32>
    %9 = arith.mulf %8, %8 : vector<8x512xf32>
    %cst_5 = arith.constant dense<0.000000e+00> : vector<8xf32>
    %10 = vector.multi_reduction <add>, %9, %cst_5 [1] : vector<8x512xf32> to vector<8xf32>
    %11 = vector.shape_cast %10 : vector<8xf32> to vector<8x1xf32>
    %cst_6 = arith.constant 5.120000e+02 : f32
    %12 = vector.broadcast %cst_6 : f32 to vector<8x1xf32>
    %13 = arith.divf %11, %12 : vector<8x1xf32>
    %cst_7 = arith.constant 9.99999974E-6 : f32
    %14 = vector.broadcast %cst_7 : f32 to vector<8x1xf32>
    %15 = arith.addf %13, %14 : vector<8x1xf32>
    %16 = math.rsqrt %15 : vector<8x1xf32>
    %c0_8 = arith.constant 0 : index
    %c0_9 = arith.constant 0 : index
    %c0_10 = arith.constant 0 : index
    %17 = vector.load %arg2[%c0_8, %c0_9, %c0_10] : memref<2x8x1xf32, #tpu.memory_space<vmem>>, vector<1x8x1xf32>
    %18 = vector.shape_cast %17 : vector<1x8x1xf32> to vector<8x1xf32>
    %19 = arith.mulf %18, %16 : vector<8x1xf32>
    %c1 = arith.constant 1 : index
    %c0_11 = arith.constant 0 : index
    %c0_12 = arith.constant 0 : index
    %20 = vector.load %arg2[%c1, %c0_11, %c0_12] : memref<2x8x1xf32, #tpu.memory_space<vmem>>, vector<1x8x1xf32>
    %21 = vector.shape_cast %20 : vector<1x8x1xf32> to vector<8x1xf32>
    %22 = arith.mulf %6, %19 : vector<8x1xf32>
    %23 = arith.subf %21, %22 : vector<8x1xf32>
    %24 = vector.broadcast %19 : vector<8x1xf32> to vector<8x512xf32>
    %25 = arith.mulf %2, %24 : vector<8x512xf32>
    %26 = vector.broadcast %23 : vector<8x1xf32> to vector<8x512xf32>
    %27 = arith.addf %25, %26 : vector<8x512xf32>
    %28 = vector.extract_strided_slice %27 {offsets = [0, 0], sizes = [8, 256], strides = [1, 1]} : vector<8x512xf32> to vector<8x256xf32>
    %c0_13 = arith.constant 0 : index
    %c0_14 = arith.constant 0 : index
    %c0_15 = arith.constant 0 : index
    %29 = vector.load %arg3[%c0_13, %c0_14, %c0_15] : memref<2x8x256xf32, #tpu.memory_space<vmem>>, vector<1x8x256xf32>
    %30 = vector.shape_cast %29 : vector<1x8x256xf32> to vector<8x256xf32>
    %31 = vector.shape_cast %28 : vector<8x256xf32> to vector<1x8x256xf32>
    tpu.vector_store %arg3[%c0_13, %c0_14, %c0_15], %31 {strides = array<i32>} : memref<2x8x256xf32, #tpu.memory_space<vmem>>, vector<1x8x256xf32>,
    %32 = vector.extract_strided_slice %27 {offsets = [0, 256], sizes = [8, 256], strides = [1, 1]} : vector<8x512xf32> to vector<8x256xf32>
    %c1_16 = arith.constant 1 : index
    %c0_17 = arith.constant 0 : index
    %c0_18 = arith.constant 0 : index
    %33 = vector.load %arg3[%c1_16, %c0_17, %c0_18] : memref<2x8x256xf32, #tpu.memory_space<vmem>>, vector<1x8x256xf32>
    %34 = vector.shape_cast %33 : vector<1x8x256xf32> to vector<8x256xf32>
    %35 = vector.shape_cast %32 : vector<8x256xf32> to vector<1x8x256xf32>
    tpu.vector_store %arg3[%c1_16, %c0_17, %c0_18], %35 {strides = array<i32>} : memref<2x8x256xf32, #tpu.memory_space<vmem>>, vector<1x8x256xf32>,
    return
  }
}

</mosaic_0001>

<bundles_post_ra>
// kernel: tcn_forward.1
= control target key start
LH: loop header
LB: loop body
LE: loop exit
PB: predicated region body
PF: predicated region fallthrough
CT: control target
= control target key end

     0   :  { %vm39_vm0 = vcmask 1043456   ;;  %vm35_vm1 = vcmask 293888   ;;  %v222_v28 = vmov 512.0   ;;  %v223_v48 = vmov 0   ;;  %s325_s0 = inlined_call_operand.vmem [shape: f32[36,512], index: 0, kind: input, shape index: {}]   ;;  %s326_s1 = inlined_call_operand.vmem [shape: f32[8,36], index: 1, kind: input, shape index: {}]   ;;  %s327_s2 = inlined_call_operand.vmem [shape: f32[2,8,1], index: 2, kind: input, shape index: {}]   ;;  %s328_s3 = inlined_call_operand.vmem [shape: f32[2,8,256], index: 3, kind: output, shape index: {}]  }
   0x1   :  { %v33_v0 = vld [vmem:[%s325_s0 + $0x90] sm:$0xf]  ;;  %v34_v2 = vld [vmem:[%s325_s0 + $0x98] sm:$0xf]  ;;  %v31_v3 = vld [vmem:[%s325_s0 + $0x80] sm:$0xf]  ;;  %218 = vrcp.f32 %v222_v28  ;;  %216 = vset.pattern.permute.xlu1 %v223_v48  ;;  %217 = vset.pattern.permute.xlu0 %v223_v48 }
   0x2   :  { %v29_v1 = vld [vmem:[%s325_s0 + $0x70] sm:$0xff]  ;;  %207 = vmatpush.msk.msra.mxu2 %vm39_vm0, %v33_v0  ;;  %209 = vmatpush.msk.msra.mxu3 %vm39_vm0, %v34_v2  ;;  %v32_v4 = vld [vmem:[%s325_s0 + $0x88] sm:$0xf]  ;;  %v30_v6 = vld [vmem:[%s325_s0 + $0x78] sm:$0xff] }
   0x3   :  { %v25_v5 = vld [vmem:[%s325_s0 + $0x50] sm:$0xff]  ;;  %203 = vmatpush.msk.msra.mxu0 %vm39_vm0, %v31_v3  ;;  %205 = vmatpush.msk.msra.mxu1 %vm39_vm0, %v32_v4  ;;  %v27_v7 = vld [vmem:[%s325_s0 + $0x60] sm:$0xff]  ;;  %v28_v8 = vld [vmem:[%s325_s0 + $0x68] sm:$0xff] }
   0x4   :  { %104 = vmatpush.msra.mxu2 %v29_v1  ;;  %124 = vmatpush.msra.mxu3 %v30_v6  ;;  %v26_v9 = vld [vmem:[%s325_s0 + $0x58] sm:$0xff]  ;;  %v23_v10 = vld [vmem:[%s325_s0 + $0x40] sm:$0xff]  ;;  %v21_v11 = vld [vmem:[%s325_s0 + $0x30] sm:$0xff] }
   0x5   :  { %64 = vmatpush.msra.mxu0 %v27_v7  ;;  %84 = vmatpush.msra.mxu1 %v28_v8  ;;  %v24_v12 = vld [vmem:[%s325_s0 + $0x48] sm:$0xff]  ;;  %v22_v13 = vld [vmem:[%s325_s0 + $0x38] sm:$0xff]  ;;  %v19_v14 = vld [vmem:[%s325_s0 + $0x20] sm:$0xff] }
   0x6   :  { %105 = vmatpush.msra.mxu2 %v25_v5  ;;  %125 = vmatpush.msra.mxu3 %v26_v9  ;;  %v20_v15 = vld [vmem:[%s325_s0 + $0x28] sm:$0xff]  ;;  %v17_v16 = vld [vmem:[%s325_s0 + $0x10] sm:$0xff]  ;;  %v18_v17 = vld [vmem:[%s325_s0 + $0x18] sm:$0xff] }
   0x7   :  { %65 = vmatpush.msra.mxu0 %v23_v10  ;;  %85 = vmatpush.msra.mxu1 %v24_v12  ;;  %v14_v18 = vld [vmem:[%s326_s1] sm:$0xff]  ;;  %v16_v20 = vld [vmem:[%s325_s0 + $0x8] sm:$0xff]  ;;  %v219_v29 = vpop.eup %218 }
   0x8   :  { %106 = vmatpush.msra.mxu2 %v21_v11  ;;  %126 = vmatpush.msra.mxu3 %v22_v13  ;;  %v15_v19 = vld [vmem:[%s325_s0] sm:$0xff]  ;;  %v138_v30 = vmul.f32 512.0, %v219_v29  ;;  %vm142_vm2 = vweird.f32 %v219_v29  ;;  %v211_v62 = vld [vmem:[%s327_s2 + $0x8] sm:$0xff] }
   0x9   :  { %66 = vmatpush.msra.mxu0 %v19_v14  ;;  %86 = vmatpush.msra.mxu1 %v20_v15  ;;  %v170_v58 = vld [vmem:[%s327_s2] sm:$0xff] }
   0xa   :  { %107 = vmatpush.msra.mxu2 %v17_v16  ;;  %127 = vmatpush.msra.mxu3 %v18_v17  ;;  %v139_v31 = vsub.f32 1.0, %v138_v30 }
   0xb   :  { %208 = vmatmul.msk.f32.vlgmr.msra.gmra.mxu2 %vm35_vm1, %v14_v18  ;;  %210 = vmatmul.msk.f32.vlgmr.msra.gmra.mxu3 %vm35_vm1, %v14_v18 }
   0xc   :  { %67 = vmatpush.msra.mxu0 %v15_v19  ;;  %87 = vmatpush.msra.mxu1 %v16_v20  ;;  %v140_v32 = vmul.f32 %v219_v29, %v139_v31 }
   0xd   :  { %204 = vmatmul.msk.f32.vlgmr.msra.gmra.mxu0 %vm35_vm1, %v14_v18  ;;  %206 = vmatmul.msk.f32.vlgmr.msra.gmra.mxu1 %vm35_vm1, %v14_v18 }
   0xe   :  { %v141_v33 = vadd.f32 %v219_v29, %v140_v32 }
  0x10   :  { %v143_v34 = vsel %vm142_vm2, %v219_v29, %v141_v33 }
  0x8a   :  { %v69_v21 = vpop.f32.mrf.mxu0  ;;  %v89_v22 = vpop.f32.mrf.mxu1 }
  0x8b   :  { %v132_v23 = vadd.f32 %v89_v22, %v69_v21 }
  0x8e   :  { %v109_v24 = vpop.f32.mrf.mxu2  ;;  %v129_v25 = vpop.f32.mrf.mxu3 }
  0x8f   :  { %v133_v26 = vadd.f32 %v132_v23, %v109_v24 }
  0x91   :  { %v134_v27 = vadd.f32 %v133_v26, %v129_v25 }
  0x93   :  { %135 = vadd.xlane.f32.xlu0 %v134_v27 }
 0x106   :  { %v136_v35 = vpop.xlane.xlu0 %135 }
 0x107   :  { %v144_v36 = vmul.f32 %v143_v34, %v136_v35 }
 0x109   :  { %v145_v37 = vsub.f32 %v69_v21, %v144_v36  ;;  %v146_v38 = vsub.f32 %v89_v22, %v144_v36  ;;  %v147_v39 = vsub.f32 %v109_v24, %v144_v36  ;;  %v148_v40 = vsub.f32 %v129_v25, %v144_v36 }
 0x10b   :  { %v149_v41 = vmul.f32 %v145_v37, %v145_v37  ;;  %v150_v42 = vmul.f32 %v146_v38, %v146_v38  ;;  %v151_v43 = vmul.f32 %v147_v39, %v147_v39  ;;  %v152_v45 = vmul.f32 %v148_v40, %v148_v40 }
 0x10d   :  { %v153_v44 = vadd.f32 %v150_v42, %v149_v41 }
 0x10f   :  { %v154_v46 = vadd.f32 %v153_v44, %v151_v43 }
 0x111   :  { %v155_v47 = vadd.f32 %v154_v46, %v152_v45 }
 0x113   :  { %156 = vadd.xlane.f32.xlu0 %v155_v47 }
 0x186   :  { %v157_v49 = vpop.xlane.xlu0 %156 }
 0x187   :  { %v158_v50 = vmul.f32 %v157_v49, %v143_v34 }
 0x189   :  { %v159_v51 = vadd.f32 1e-05, %v158_v50 }
 0x18b   :  { %220 = vrsqrt.f32 %v159_v51  ;;  %vm166_vm4 = vweird.f32 %v159_v51 }
 0x191   :  { %v221_v52 = vpop.eup %220 }
 0x192   :  { %v161_v53 = vmul.f32 %v221_v52, %v159_v51  ;;  %vm167_vm3 = vweird.f32 %v221_v52 }
 0x193   :  { %vm168_vm5 = vmor %vm166_vm4, %vm167_vm3 }
 0x194   :  { %v162_v54 = vmul.f32 %v221_v52, %v161_v53 }
 0x196   :  { %v163_v55 = vmul.f32 0.5, %v162_v54 }
 0x198   :  { %v164_v56 = vsub.f32 1.5, %v163_v55 }
 0x19a   :  { %v165_v57 = vmul.f32 %v221_v52, %v164_v56 }
 0x19c   :  { %v169_v59 = vsel %vm168_vm5, %v221_v52, %v165_v57 }
 0x19d   :  { %v171_v60 = vmul.f32 %v170_v58, %v169_v59 }
 0x19f   :  { %178 = vperm.xlu1 %216, %v171_v60   ;;  %v174_v61 = vmul.f32 %v171_v60, %v144_v36 }
 0x1a1   :  { %v175_v63 = vsub.f32 %v211_v62, %v174_v61 }
 0x1a7   :  { %187 = vperm.xlu1 %216, %v175_v63  }
 0x211   :  { %v179_v0 = vpop.permute.xlu1 %178 }
 0x212   :  { %v181_v1 = vmul.f32 %v179_v0, %v69_v21  ;;  %v182_v2 = vmul.f32 %v179_v0, %v89_v22  ;;  %v183_v3 = vmul.f32 %v179_v0, %v109_v24  ;;  %v184_v4 = vmul.f32 %v179_v0, %v129_v25 }
 0x219   :  { %v188_v5 = vpop.permute.xlu1 %187 }
 0x21a   :  { %v190_v6 = vadd.f32 %v188_v5, %v181_v1  ;;  %v191_v7 = vadd.f32 %v188_v5, %v182_v2  ;;  %v192_v8 = vadd.f32 %v188_v5, %v183_v3  ;;  %v193_v9 = vadd.f32 %v188_v5, %v184_v4 }
 0x21c   :  { %194 = vst [vmem:[%s328_s3] sm:$0xff] %v190_v6 }
 0x21d   :  { %195 = vst [vmem:[%s328_s3 + $0x8] sm:$0xff] %v191_v7 }
 0x21e   :  { %212 = vst [vmem:[%s328_s3 + $0x10] sm:$0xff] %v192_v8 }
 0x21f   :  { %213 = vst [vmem:[%s328_s3 + $0x18] sm:$0xff] %v193_v9 }

</bundles_post_ra>
